<compile_context>
chip_gen: v6e
topology: v6e:2x2x1
jax: 0.10.0
libtpu: 0.0.40
codegen_flags: <defaults>
</compile_context>

<pallas_src>
import jax
import jax.numpy as jnp
from jax.experimental import pallas as pl
from jax.experimental.pallas import tpu as pltpu


def _linear_kernel(x_ref, w_ref, b_ref, o_ref):
    # VPU-only linear: acc[m, n] = b[n] + sum_k x[m, k] * w[k, n]   (K = 4, unrolled)
    x = x_ref[...].astype(jnp.float32)   # (TM, IN)
    w = w_ref[...].astype(jnp.float32)   # (IN, OUT)  -- pre-transposed once
    b = b_ref[...].astype(jnp.float32)   # (1, OUT)
    in_features = w.shape[0]             # static (== 4), Python unroll is fine

    # Fold the bias into the accumulator init: one fewer full-tile vadd pass.
    acc = b + x[:, 0:1] * w[0:1, :]                   # (TM, OUT)
    for k in range(1, in_features):                   # 3 more broadcast FMAs
        acc = acc + x[:, k : k + 1] * w[k : k + 1, :]

    o_ref[...] = acc.astype(o_ref.dtype)


def prepare_linear_params(weight_oi, bias):
    """One-time parameter prep (not on the per-call critical path).

    nn.Linear stores weight as (out_features, in_features); the kernel wants
    (in_features, out_features) so no transpose op is emitted per call.
    """
    return weight_oi.T, bias.reshape(1, -1)


# VMEM accounting (lane-padded!): each (tm, 4)/(tm, 5) f32 block occupies
# tm * 128 lanes * 4 B = tm * 512 B in VMEM. Double-buffered input + output
# => ~tm * 2 KiB. Keep that <= ~24 MiB so it fits v5e/v6e/v7x with headroom.
_LANE_BYTES = 128 * 4                      # one padded f32 row
_PER_ROW_BYTES = 2 * 2 * _LANE_BYTES      # in + out, double-buffered
_VMEM_TILE_BUDGET = 24 << 20              # conservative across chip generations
_VMEM_LIMIT_BYTES = 32 << 20              # explicit scoped-VMEM limit (<= v7x 64 MiB)


def _pick_batch_tile(B, tm_cap):
    # Hard clamp from the padded-VMEM budget (~12K rows), then the user cap,
    # rounded down to a multiple of 8.
    tm_vmem_max = (_VMEM_TILE_BUDGET // _PER_ROW_BYTES) // 8 * 8
    tm = max(8, min(tm_cap, tm_vmem_max) // 8 * 8)
    if B <= tm:
        # Block == full array: always legal regardless of divisibility, and a
        # single grid step is optimal at small B (per-step overhead dominates).
        return B
    # B > tm  =>  grid >= 2 automatically, so megacore ("parallel" batch axis)
    # gets work on both v7x TensorCores.
    return tm


def linear_pallas(x, w_io, bias_2d, *, tm_cap=8192):
    """y = x @ w_io + bias, with w_io = weight.T  (matches torch.nn.Linear).

    x:       (B, in_features)
    w_io:    (in_features, out_features)   -- pre-transposed parameter
    bias_2d: (1, out_features)
    """
    B, IN = x.shape
    OUT = w_io.shape[1]

    tm = _pick_batch_tile(B, tm_cap)
    grid = (pl.cdiv(B, tm),)

    itemsize = jnp.dtype(x.dtype).itemsize
    cost = pl.CostEstimate(
        flops=2 * B * IN * OUT,
        transcendentals=0,
        bytes_accessed=B * IN * itemsize + B * OUT * itemsize
        + IN * OUT * 4 + OUT * 4,
    )

    return pl.pallas_call(
        _linear_kernel,
        out_shape=jax.ShapeDtypeStruct((B, OUT), x.dtype),
        grid=grid,
        in_specs=[
            pl.BlockSpec((tm, IN), lambda i: (i, 0)),    # batch-tiled input
            pl.BlockSpec((IN, OUT), lambda i: (0, 0)),   # resident weight
            pl.BlockSpec((1, OUT), lambda i: (0, 0)),    # resident bias
        ],
        out_specs=pl.BlockSpec((tm, OUT), lambda i: (i, 0)),
        compiler_params=pltpu.CompilerParams(
            # Batch tiles are independent -> "parallel" lets v7x's two
            # TensorCores split the grid; harmless on single-TC v5e/v6e.
            dimension_semantics=("parallel",),
            # Big batch tiles (padded ~2 KiB/row, double-buffered) need more
            # than v5e's 16 MiB default scoped VMEM; 32 MiB is safe everywhere.
            vmem_limit_bytes=_VMEM_LIMIT_BYTES,
        ),
        cost_estimate=cost,
    )(x, w_io, bias_2d)


if __name__ == "__main__":
    key = jax.random.PRNGKey(0)
    k_x, k_w, k_b = jax.random.split(key, 3)

    B, IN, OUT = 8, 4, 5

    # Deterministic "parameters" (synthetic init; shapes match nn.Linear(4, 5)).
    bound = 1.0 / jnp.sqrt(IN)
    weight = jax.random.uniform(k_w, (OUT, IN), jnp.float32, -bound, bound)
    bias = jax.random.uniform(k_b, (OUT,), jnp.float32, -bound, bound)

    x = jax.random.normal(k_x, (B, IN), jnp.float32)

    # One-time parameter prep (transpose + bias reshape), then the kernel call.
    w_io, b2d = prepare_linear_params(weight, bias)
    y = linear_pallas(x, w_io, b2d)
    y = jax.block_until_ready(y)

    # Reference check (plain JAX) against nn.Linear semantics.
    y_ref = x @ weight.T + bias
    assert y.shape == (B, OUT)
    assert jnp.allclose(y, y_ref, atol=1e-5, rtol=1e-5)

    print("KERNEL_OK")
</pallas_src>

<mosaic_0001>
module attributes {stable_mosaic.version = 11 : i64} {
  func.func @_linear_kernel(%arg0: i32, %arg1: memref<8x4xf32, #tpu.memory_space<vmem>>, %arg2: memref<4x5xf32, #tpu.memory_space<vmem>>, %arg3: memref<1x5xf32, #tpu.memory_space<vmem>>, %arg4: memref<8x5xf32, #tpu.memory_space<vmem>>) attributes {dimension_semantics = [#tpu.dimension_semantics<parallel>], iteration_bounds = array<i64: 1>, scalar_prefetch = 0 : i64, scratch_operands = 0 : i64, tpu.core_type = #tpu.core_type<tc>, window_params = [{transform_indices = @transform_0, window_bounds = array<i64: 8, 4>}, {pipeline_mode = #tpu.pipeline_mode<synchronous>, transform_indices = @transform_1, window_bounds = array<i64: 4, 5>}, {pipeline_mode = #tpu.pipeline_mode<synchronous>, transform_indices = @transform_2, window_bounds = array<i64: 1, 5>}, {transform_indices = @transform_3, window_bounds = array<i64: 8, 5>}]} {
    %c0 = arith.constant 0 : index
    %c0_0 = arith.constant 0 : index
    %0 = vector.load %arg1[%c0, %c0_0] : memref<8x4xf32, #tpu.memory_space<vmem>>, vector<8x4xf32>
    %c0_1 = arith.constant 0 : index
    %c0_2 = arith.constant 0 : index
    %1 = vector.load %arg2[%c0_1, %c0_2] : memref<4x5xf32, #tpu.memory_space<vmem>>, vector<4x5xf32>
    %c0_3 = arith.constant 0 : index
    %c0_4 = arith.constant 0 : index
    %2 = vector.load %arg3[%c0_3, %c0_4] : memref<1x5xf32, #tpu.memory_space<vmem>>, vector<1x5xf32>
    %3 = vector.extract_strided_slice %0 {offsets = [0, 0], sizes = [8, 1], strides = [1, 1]} : vector<8x4xf32> to vector<8x1xf32>
    %4 = vector.extract_strided_slice %1 {offsets = [0, 0], sizes = [1, 5], strides = [1, 1]} : vector<4x5xf32> to vector<1x5xf32>
    %5 = vector.broadcast %3 : vector<8x1xf32> to vector<8x5xf32>
    %6 = vector.broadcast %4 : vector<1x5xf32> to vector<8x5xf32>
    %7 = arith.mulf %5, %6 : vector<8x5xf32>
    %8 = vector.broadcast %2 : vector<1x5xf32> to vector<8x5xf32>
    %9 = arith.addf %8, %7 : vector<8x5xf32>
    %10 = vector.extract_strided_slice %0 {offsets = [0, 1], sizes = [8, 1], strides = [1, 1]} : vector<8x4xf32> to vector<8x1xf32>
    %11 = vector.extract_strided_slice %1 {offsets = [1, 0], sizes = [1, 5], strides = [1, 1]} : vector<4x5xf32> to vector<1x5xf32>
    %12 = vector.broadcast %10 : vector<8x1xf32> to vector<8x5xf32>
    %13 = vector.broadcast %11 : vector<1x5xf32> to vector<8x5xf32>
    %14 = arith.mulf %12, %13 : vector<8x5xf32>
    %15 = arith.addf %9, %14 : vector<8x5xf32>
    %16 = vector.extract_strided_slice %0 {offsets = [0, 2], sizes = [8, 1], strides = [1, 1]} : vector<8x4xf32> to vector<8x1xf32>
    %17 = vector.extract_strided_slice %1 {offsets = [2, 0], sizes = [1, 5], strides = [1, 1]} : vector<4x5xf32> to vector<1x5xf32>
    %18 = vector.broadcast %16 : vector<8x1xf32> to vector<8x5xf32>
    %19 = vector.broadcast %17 : vector<1x5xf32> to vector<8x5xf32>
    %20 = arith.mulf %18, %19 : vector<8x5xf32>
    %21 = arith.addf %15, %20 : vector<8x5xf32>
    %22 = vector.extract_strided_slice %0 {offsets = [0, 3], sizes = [8, 1], strides = [1, 1]} : vector<8x4xf32> to vector<8x1xf32>
    %23 = vector.extract_strided_slice %1 {offsets = [3, 0], sizes = [1, 5], strides = [1, 1]} : vector<4x5xf32> to vector<1x5xf32>
    %24 = vector.broadcast %22 : vector<8x1xf32> to vector<8x5xf32>
    %25 = vector.broadcast %23 : vector<1x5xf32> to vector<8x5xf32>
    %26 = arith.mulf %24, %25 : vector<8x5xf32>
    %27 = arith.addf %21, %26 : vector<8x5xf32>
    %c0_5 = arith.constant 0 : index
    %c0_6 = arith.constant 0 : index
    %28 = vector.load %arg4[%c0_5, %c0_6] : memref<8x5xf32, #tpu.memory_space<vmem>>, vector<8x5xf32>
    tpu.vector_store %arg4[%c0_5, %c0_6], %27 {strides = array<i32>} : memref<8x5xf32, #tpu.memory_space<vmem>>, vector<8x5xf32>,
    return
  }
  func.func @transform_0(%arg0: i32) -> (i32, i32) {
    %c0_i32 = arith.constant 0 : i32
    %c0_i32_0 = arith.constant 0 : i32
    return %arg0, %c0_i32 : i32, i32
  }
  func.func @transform_1(%arg0: i32) -> (i32, i32) {
    %c0_i32 = arith.constant 0 : i32
    %c0_i32_0 = arith.constant 0 : i32
    %c0_i32_1 = arith.constant 0 : i32
    return %c0_i32, %c0_i32_0 : i32, i32
  }
  func.func @transform_2(%arg0: i32) -> (i32, i32) {
    %c0_i32 = arith.constant 0 : i32
    %c0_i32_0 = arith.constant 0 : i32
    %c0_i32_1 = arith.constant 0 : i32
    return %c0_i32, %c0_i32_0 : i32, i32
  }
  func.func @transform_3(%arg0: i32) -> (i32, i32) {
    %c0_i32 = arith.constant 0 : i32
    %c0_i32_0 = arith.constant 0 : i32
    return %arg0, %c0_i32 : i32, i32
  }
}

</mosaic_0001>

<bundles_post_ra>
// kernel: tpu_custom_call.1
= control target key start
LH: loop header
LB: loop body
LE: loop exit
PB: predicated region body
PF: predicated region fallthrough
CT: control target
= control target key end

     0   :  { %v114_v1 = vmov 0   ;;  %v115_v2 = vmov 2   ;;  %s151_s0 = inlined_call_operand.vmem [shape: f32[8,4], index: 0, kind: input, shape index: {}]   ;;  %s152_s1 = inlined_call_operand.vmem [shape: f32[4,5], index: 1, kind: input, shape index: {}]   ;;  %s153_s2 = inlined_call_operand.vmem [shape: f32[1,5], index: 2, kind: input, shape index: {}]   ;;  %s154_s3 = inlined_call_operand.hbm [shape: f32[8,5], index: 3, kind: output, shape index: {}]  }
   0x1   :  { %v15_v0 = vld [vmem:[%s151_s0] sm:$0xff]  ;;  %87 = vset.pattern.permute.xlu0 %v114_v1  ;;  %89 = vset.pattern.permute.xlu1 %v115_v2 }
   0x2   :  { %8 = vsyncpa [#allocation3], 0  ;;  %20 = vperm.xlu0 %87, %v15_v0   ;;  %46 = vperm.xlu1 %89, %v15_v0   ;;  %v116_v3 = vmov 1   ;;  %v117_v4 = vmov 3   ;;  %v23_v5 = vlaneseq  ;;  %v16_v8 = vld [vmem:[%s152_s1] sm:$0xf] }
   0x3   :  { %v81_v17 = vld [vmem:[%s153_s2] ss:$0 sm:$0xff]  ;;  %s118_s1 = smov [#allocation2]   ;;  %vm65_vm0 = vcmask 39936  }
   0x4   :  { %v24_v6 = vshrl.u32 %v23_v5, 7  ;;  %s73_s17 = sshll.u32 %s118_s1, 4  ;;  %s74_s17 = int_to_ptr.vmem [resolvable:$true] %s73_s17 }
   0x5   :  { %s92_s18 = scalar_lea.vmem %s74_s17, 128  ;;  %p97_p1 = scmp.lt.s32.totalorder %s74_s17, %s74_s17 }
   0x6   :  { %88 = vset.pattern.permute.xlu0 %v116_v3  ;;  %90 = vset.pattern.permute.xlu1 %v117_v4  ;;  %v25_v7 = vsub.s32 0, %v24_v6  ;;  %v41_v10 = vsub.s32 1, %v24_v6  ;;  %v51_v12 = vsub.s32 2, %v24_v6  ;;  %v61_v14 = vsub.s32 3, %v24_v6  ;;  %p93_p0 = scmp.ne.s32.totalorder %s74_s17, %s92_s18  ;;  %p98_p2 = scmp.lt.s32.totalorder %s92_s18, %s92_s18 }
   0x7   :  { %36 = vperm.xlu0 %88, %v15_v0   ;;  %56 = vperm.xlu1 %90, %v15_v0  }
   0x8   :  { %v26_v9 = vrot.slane %v16_v8, %v25_v7  ;;  %v42_v16 = vrot.slane %v16_v8, %v41_v10  ;;  %v52_v18 = vrot.slane %v16_v8, %v51_v12  ;;  %v62_v19 = vrot.slane %v16_v8, %v61_v14  ;;  %p99_p3 = por %p98_p2, %p97_p1 }
   0xa   :  { %p100_p4 = pnand %p99_p3, %p93_p0 }
   0xb   :  { %91 = vset.pattern.permute.xlu0 %v117_v4 }
  0x7d   :  { %v21_v11 = vpop.permute.xlu0 %20  ;;  %v47_v13 = vpop.permute.xlu1 %46 }
  0x7e   :  { %v27_v15 = vmul.f32 %v26_v9, %v21_v11  ;;  %v53_v24 = vmul.f32 %v52_v18, %v47_v13 }
  0x80   :  { %v34_v22 = vadd.f32 %v81_v17, %v27_v15 }
  0x82   :  { %v37_v20 = vpop.permute.xlu0 %36  ;;  %v57_v21 = vpop.permute.xlu1 %56 }
  0x83   :  { %v43_v23 = vmul.f32 %v42_v16, %v37_v20  ;;  %v63_v26 = vmul.f32 %v62_v19, %v57_v21 }
  0x85   :  { %v44_v25 = vadd.f32 %v43_v23, %v34_v22 }
  0x87   :  { %v54_v27 = vadd.f32 %v53_v24, %v44_v25 }
  0x89   :  { %v64_v28 = vadd.f32 %v63_v26, %v54_v27 }
  0x8b   :  { %66 = vst.msk [vmem:[#allocation2] sm:$0xff] %vm65_vm0, %v64_v28 }
  0x8c   :  { %103 = shalt.err (!%p100_p4)
}
  0x8d   :  { %76 = dma.vmem_to_hbm [thread:$0]  %s74_s17, 128, %s154_s3, [#allocation3]  }
  0x8e   :  { %112 = dma.done.wait [#allocation3], 128  }
  0x8f   :  { %113 = vsyncadd [#allocation3], 4294967168 }
  0x90   :  { %80 = vsyncpa [#allocation3], 1 }

</bundles_post_ra>
